<compile_context>
chip_gen: v7x
topology: tpu7x:2x2x1
jax: 0.10.0
libtpu: 0.0.40
codegen_flags: <defaults>
</compile_context>

<pallas_src>
import functools

import jax
import jax.numpy as jnp
from jax.experimental import pallas as pl
from jax.experimental.pallas import tpu as pltpu

LANE = 128
SUB = 32                  # row-tile alignment (covers f32/bf16 sublane packing)
MAX_TILE_ROWS = 2048      # up to 2048 x 128 voxels per tile per plane
EPS = 1e-8


def _round_up(x, m):
    return -(-x // m) * m


def _cdiv(a, b):
    return -(-a // b)


def _choose_tiling(rows):
    """Pick (cores, tile_rows, tiles_per_core).

    cores * tiles_per_core tiles of tile_rows rows cover `rows` in the cdiv
    sense (only the trailing tile may be ragged, no tile is fully out of
    bounds).  tile_rows is a multiple of SUB and <= min(rows, MAX_TILE_ROWS).
    """
    max_tr = min(MAX_TILE_ROWS, (rows // SUB) * SUB)
    nt = _cdiv(rows, max_tr)
    nt += nt % 2                                   # even count -> 2-core split
    while nt <= _cdiv(rows, SUB):
        tr = min(max_tr, _round_up(_cdiv(rows, nt), SUB))
        if _cdiv(rows, tr) == nt:                  # exact, balanced cover
            return 2, tr, nt // 2
        nt += 2
    return 1, max_tr, _cdiv(rows, max_tr)          # cannot split: single core


def _miou_kernel(d_ref, t_ref, m_ref, inter_ref, union_ref,
                 acc_i_ref, acc_u_ref, *, tile_rows, valid_rows, mask_tail):
    # d_ref/t_ref/m_ref are (1, tile_rows, 128) blocks of one batch element.
    t_idx = pl.program_id(2)

    @pl.when(t_idx == 0)
    def _():
        acc_i_ref[...] = jnp.zeros_like(acc_i_ref)
        acc_u_ref[...] = jnp.zeros_like(acc_u_ref)

    d = d_ref[...].astype(jnp.float32)      # logit diff x1 - x0
    t = t_ref[...].astype(jnp.float32)      # target class index in {0, 1}
    m = m_ref[...].astype(jnp.float32)      # validity mask in {0, 1}

    if mask_tail:
        # Ragged trailing tile: rows past `valid_rows` hold undefined VMEM data
        # (including possible NaNs), so zero all three planes there.
        row0 = (pl.program_id(0) * pl.num_programs(2) + t_idx) * tile_rows
        rid = row0 + jax.lax.broadcasted_iota(jnp.int32, d.shape, 1)
        ok = rid < valid_rows
        d = jnp.where(ok, d, 0.0)
        t = jnp.where(ok, t, 0.0)
        m = jnp.where(ok, m, 0.0)

    # softmax over 2 classes == sigmoid(x1 - x0); tanh form is one EUP op.
    p1 = 0.5 * (jnp.tanh(0.5 * d) + 1.0)

    p1v = p1 * m              # inputs_valid[..., 1]
    t1 = t * m                # target_oneHot[..., 1]  (target, mask are {0,1})
    prod = p1v * t1

    # (8, 128) partial sums: pure VPU adds per tile; the XLU cross-lane reduce
    # happens once per (core, batch) in the epilogue below.
    acc_i_ref[...] += jnp.sum(prod.reshape(tile_rows // 8, 8, LANE), axis=0)
    acc_u_ref[...] += jnp.sum((p1v + t1 - prod).reshape(tile_rows // 8, 8, LANE),
                              axis=0)

    @pl.when(t_idx == pl.num_programs(2) - 1)
    def _():
        i_tot = jnp.sum(acc_i_ref[...])
        u_tot = jnp.sum(acc_u_ref[...])
        inter_ref[...] = jnp.broadcast_to(i_tot, inter_ref.shape)
        union_ref[...] = jnp.broadcast_to(u_tot, union_ref.shape)


@functools.partial(jax.jit, static_argnames=("n_classes",))
def miou_loss_new(inputs, target, mask, n_classes=2):
    """Returns (iou of shape (N, n_classes-1), iou.mean()) like the PyTorch module."""
    assert n_classes == 2, "kernel implemented for the module default n_classes=2"
    N, H, W, D, C = inputs.shape
    assert C == n_classes
    S = H * W * D

    # softmax over 2 classes only needs the logit difference; bf16 halves the
    # dominant kernel-input stream (upcast to f32 happens inside the kernel).
    x = inputs.reshape(N, S, C)
    d = (x[:, :, 1] - x[:, :, 0]).astype(jnp.bfloat16)
    # TODO(synk): fuse the channel diff into the kernel (lane-interleaved
    # (N, rows, 256) view + strided in-kernel deinterleave) to drop this XLA
    # pass too; kept out for lowering-robustness.

    # target / mask: free reshape in their native dtype -- no int8 round trip.
    t = target.reshape(N, S)
    m = mask.reshape(N, S)

    # View the flattened voxels as (N, rows, 128) lane-dense planes.  Pad only
    # when S is not lane-aligned (<128 voxels) or the volume is tiny; padded
    # voxels have mask=0 / target=0 so they contribute nothing.
    rows = max(_cdiv(S, LANE), SUB)
    Sp = rows * LANE
    if Sp != S:
        pad = ((0, 0), (0, Sp - S))
        d, t, m = jnp.pad(d, pad), jnp.pad(t, pad), jnp.pad(m, pad)
    d = d.reshape(N, rows, LANE)
    t = t.reshape(N, rows, LANE)
    m = m.reshape(N, rows, LANE)

    cores, tile_rows, tiles_per_core = _choose_tiling(rows)
    mask_tail = cores * tiles_per_core * tile_rows != rows

    kernel = functools.partial(_miou_kernel, tile_rows=tile_rows,
                               valid_rows=rows, mask_tail=mask_tail)

    in_spec = pl.BlockSpec(
        (1, tile_rows, LANE),
        lambda c, n, t_, T=tiles_per_core: (n, c * T + t_, 0))
    out_spec = pl.BlockSpec((1, 1, 1, LANE), lambda c, n, t_: (c, n, 0, 0))
    out_sds = jax.ShapeDtypeStruct((cores, N, 1, LANE), jnp.float32)

    inter, union = pl.pallas_call(
        kernel,
        out_shape=(out_sds, out_sds),
        grid_spec=pltpu.PrefetchScalarGridSpec(
            num_scalar_prefetch=0,
            grid=(cores, N, tiles_per_core),
            in_specs=[in_spec, in_spec, in_spec],
            out_specs=(out_spec, out_spec),
            scratch_shapes=[pltpu.VMEM((8, LANE), jnp.float32),
                            pltpu.VMEM((8, LANE), jnp.float32)],
        ),
        compiler_params=pltpu.CompilerParams(
            dimension_semantics=("parallel", "parallel", "arbitrary"),
            vmem_limit_bytes=32 * 1024 * 1024,
        ),
    )(d, t, m)

    # Tiny per-core combine + eps-divide in XLA (2*N scalars).
    inter = inter[:, :, 0, 0].sum(axis=0)          # (N,)
    union = union[:, :, 0, 0].sum(axis=0)          # (N,)
    iou = (inter / (union + EPS)).reshape(N, n_classes - 1)
    return iou, jnp.mean(iou)


def _reference(inputs, target, mask, n_classes=2):
    # Pure-JAX replica of the PyTorch forward for verification.
    N = inputs.shape[0]
    mask = mask.astype(jnp.float32)
    p = jax.nn.softmax(inputs.astype(jnp.float32), axis=-1)
    target_valid = target.astype(jnp.float32) * mask
    inputs_valid = p * mask
    one_hot = jax.nn.one_hot(target_valid[..., 0].astype(jnp.int32), n_classes,
                             dtype=jnp.float32)
    pv = inputs_valid[..., 1:]
    tv = one_hot[..., 1:]
    inter = (pv * tv).reshape(N, -1, n_classes - 1).sum(1)
    union = (pv + tv - pv * tv).reshape(N, -1, n_classes - 1).sum(1)
    iou = inter / (union + EPS)
    return iou, iou.mean()


if __name__ == "__main__":
    key = jax.random.PRNGKey(0)
    k1, k2, k3, k4, k5, k6 = jax.random.split(key, 6)

    # Case 1: module-like small volume (batch=2, 8x8x8 voxels, 2 classes).
    N, H, W, D, C = 2, 8, 8, 8, 2
    inputs = jax.random.normal(k1, (N, H, W, D, C), dtype=jnp.float32)
    target = jax.random.bernoulli(k2, 0.4, (N, H, W, D, 1)).astype(jnp.float32)
    mask = jax.random.bernoulli(k3, 0.7, (N, H, W, D, 1)).astype(jnp.float32)

    iou, iou_mean = miou_loss_new(inputs, target, mask)
    jax.block_until_ready((iou, iou_mean))
    ref_iou, ref_mean = _reference(inputs, target, mask)
    # bf16 logit-diff plane => loosen tolerance vs the f32 reference softmax.
    assert jnp.allclose(iou, ref_iou, atol=1e-3, rtol=1e-3), (iou, ref_iou)
    assert jnp.allclose(iou_mean, ref_mean, atol=1e-3, rtol=1e-3)

    # Case 2: exercises the 2-way core split and the ragged-tail row mask
    # (rows = 34, tile_rows = 32, one tile per core, no padding pass).
    N2, H2, W2, D2 = 1, 16, 16, 17
    inputs2 = jax.random.normal(k4, (N2, H2, W2, D2, C), dtype=jnp.float32)
    target2 = jax.random.bernoulli(k5, 0.4, (N2, H2, W2, D2, 1)).astype(jnp.float32)
    mask2 = jax.random.bernoulli(k6, 0.7, (N2, H2, W2, D2, 1)).astype(jnp.float32)

    iou2, mean2 = miou_loss_new(inputs2, target2, mask2)
    jax.block_until_ready((iou2, mean2))
    ref_iou2, ref_mean2 = _reference(inputs2, target2, mask2)
    assert jnp.allclose(iou2, ref_iou2, atol=1e-3, rtol=1e-3), (iou2, ref_iou2)
    assert jnp.allclose(mean2, ref_mean2, atol=1e-3, rtol=1e-3)

    print("KERNEL_OK")
</pallas_src>

<mosaic_0001>
module attributes {stable_mosaic.version = 11 : i64} {
  func.func @_miou_kernel(%arg0: i32, %arg1: i32, %arg2: i32, %arg3: memref<1x32x128xbf16, #tpu.memory_space<vmem>>, %arg4: memref<1x32x128xf32, #tpu.memory_space<vmem>>, %arg5: memref<1x32x128xf32, #tpu.memory_space<vmem>>, %arg6: memref<1x1x1x128xf32, #tpu.memory_space<vmem>>, %arg7: memref<1x1x1x128xf32, #tpu.memory_space<vmem>>, %arg8: memref<8x128xf32, #tpu.memory_space<vmem>>, %arg9: memref<8x128xf32, #tpu.memory_space<vmem>>) attributes {dimension_semantics = [#tpu.dimension_semantics<parallel>, #tpu.dimension_semantics<parallel>, #tpu.dimension_semantics<arbitrary>], iteration_bounds = array<i64: 1, 2, 1>, scalar_prefetch = 0 : i64, scratch_operands = 2 : i64, tpu.core_type = #tpu.core_type<tc>, window_params = [{transform_indices = @transform_0, window_bounds = array<i64: 1, 32, 128>}, {transform_indices = @transform_1, window_bounds = array<i64: 1, 32, 128>}, {transform_indices = @transform_2, window_bounds = array<i64: 1, 32, 128>}, {transform_indices = @transform_3, window_bounds = array<i64: 1, 1, 1, 128>}, {transform_indices = @transform_4, window_bounds = array<i64: 1, 1, 1, 128>}]} {
    %c0_i32 = arith.constant 0 : i32
    %0 = arith.cmpi eq, %arg2, %c0_i32 : i32
    %1 = arith.extui %0 : i1 to i32
    %c0_i32_0 = arith.constant 0 : i32
    %2 = arith.cmpi ne, %1, %c0_i32_0 : i32
    scf.if %2 {
      %cst_23 = arith.constant 0.000000e+00 : f32
      %32 = vector.broadcast %cst_23 : f32 to vector<8x128xf32>
      %c0_24 = arith.constant 0 : index
      %c0_25 = arith.constant 0 : index
      %33 = vector.load %arg8[%c0_24, %c0_25] : memref<8x128xf32, #tpu.memory_space<vmem>>, vector<8x128xf32>
      tpu.vector_store %arg8[%c0_24, %c0_25], %32 {strides = array<i32>} : memref<8x128xf32, #tpu.memory_space<vmem>>, vector<8x128xf32>,
      %cst_26 = arith.constant 0.000000e+00 : f32
      %34 = vector.broadcast %cst_26 : f32 to vector<8x128xf32>
      %c0_27 = arith.constant 0 : index
      %c0_28 = arith.constant 0 : index
      %35 = vector.load %arg9[%c0_27, %c0_28] : memref<8x128xf32, #tpu.memory_space<vmem>>, vector<8x128xf32>
      tpu.vector_store %arg9[%c0_27, %c0_28], %34 {strides = array<i32>} : memref<8x128xf32, #tpu.memory_space<vmem>>, vector<8x128xf32>,
    } else {
    }
    %c0 = arith.constant 0 : index
    %c0_1 = arith.constant 0 : index
    %c0_2 = arith.constant 0 : index
    %3 = vector.load %arg3[%c0, %c0_1, %c0_2] : memref<1x32x128xbf16, #tpu.memory_space<vmem>>, vector<1x32x128xbf16>
    %4 = arith.extf %3 : vector<1x32x128xbf16> to vector<1x32x128xf32>
    %c0_3 = arith.constant 0 : index
    %c0_4 = arith.constant 0 : index
    %c0_5 = arith.constant 0 : index
    %5 = vector.load %arg4[%c0_3, %c0_4, %c0_5] : memref<1x32x128xf32, #tpu.memory_space<vmem>>, vector<1x32x128xf32>
    %c0_6 = arith.constant 0 : index
    %c0_7 = arith.constant 0 : index
    %c0_8 = arith.constant 0 : index
    %6 = vector.load %arg5[%c0_6, %c0_7, %c0_8] : memref<1x32x128xf32, #tpu.memory_space<vmem>>, vector<1x32x128xf32>
    %cst = arith.constant 5.000000e-01 : f32
    %7 = vector.broadcast %cst : f32 to vector<1x32x128xf32>
    %8 = arith.mulf %7, %4 : vector<1x32x128xf32>
    %9 = math.tanh %8 : vector<1x32x128xf32>
    %cst_9 = arith.constant 1.000000e+00 : f32
    %10 = vector.broadcast %cst_9 : f32 to vector<1x32x128xf32>
    %11 = arith.addf %9, %10 : vector<1x32x128xf32>
    %cst_10 = arith.constant 5.000000e-01 : f32
    %12 = vector.broadcast %cst_10 : f32 to vector<1x32x128xf32>
    %13 = arith.mulf %12, %11 : vector<1x32x128xf32>
    %14 = arith.mulf %13, %6 : vector<1x32x128xf32>
    %15 = arith.mulf %5, %6 : vector<1x32x128xf32>
    %16 = arith.mulf %14, %15 : vector<1x32x128xf32>
    %c0_11 = arith.constant 0 : index
    %c0_12 = arith.constant 0 : index
    %17 = vector.load %arg8[%c0_11, %c0_12] : memref<8x128xf32, #tpu.memory_space<vmem>>, vector<8x128xf32>
    %18 = vector.shape_cast %16 : vector<1x32x128xf32> to vector<4x8x128xf32>
    %cst_13 = arith.constant dense<0.000000e+00> : vector<8x128xf32>
    %19 = vector.multi_reduction <add>, %18, %cst_13 [0] : vector<4x8x128xf32> to vector<8x128xf32>
    %20 = arith.addf %17, %19 : vector<8x128xf32>
    %c0_14 = arith.constant 0 : index
    %c0_15 = arith.constant 0 : index
    %21 = vector.load %arg8[%c0_14, %c0_15] : memref<8x128xf32, #tpu.memory_space<vmem>>, vector<8x128xf32>
    tpu.vector_store %arg8[%c0_14, %c0_15], %20 {strides = array<i32>} : memref<8x128xf32, #tpu.memory_space<vmem>>, vector<8x128xf32>,
    %c0_16 = arith.constant 0 : index
    %c0_17 = arith.constant 0 : index
    %22 = vector.load %arg9[%c0_16, %c0_17] : memref<8x128xf32, #tpu.memory_space<vmem>>, vector<8x128xf32>
    %23 = arith.addf %14, %15 : vector<1x32x128xf32>
    %24 = arith.subf %23, %16 : vector<1x32x128xf32>
    %25 = vector.shape_cast %24 : vector<1x32x128xf32> to vector<4x8x128xf32>
    %cst_18 = arith.constant dense<0.000000e+00> : vector<8x128xf32>
    %26 = vector.multi_reduction <add>, %25, %cst_18 [0] : vector<4x8x128xf32> to vector<8x128xf32>
    %27 = arith.addf %22, %26 : vector<8x128xf32>
    %c0_19 = arith.constant 0 : index
    %c0_20 = arith.constant 0 : index
    %28 = vector.load %arg9[%c0_19, %c0_20] : memref<8x128xf32, #tpu.memory_space<vmem>>, vector<8x128xf32>
    tpu.vector_store %arg9[%c0_19, %c0_20], %27 {strides = array<i32>} : memref<8x128xf32, #tpu.memory_space<vmem>>, vector<8x128xf32>,
    %c0_i32_21 = arith.constant 0 : i32
    %29 = arith.cmpi eq, %arg2, %c0_i32_21 : i32
    %30 = arith.extui %29 : i1 to i32
    %c0_i32_22 = arith.constant 0 : i32
    %31 = arith.cmpi ne, %30, %c0_i32_22 : i32
    scf.if %31 {
      %c0_23 = arith.constant 0 : index
      %c0_24 = arith.constant 0 : index
      %32 = vector.load %arg8[%c0_23, %c0_24] : memref<8x128xf32, #tpu.memory_space<vmem>>, vector<8x128xf32>
      %33 = vector.shape_cast %32 : vector<8x128xf32> to vector<1x8x128xf32>
      %cst_25 = arith.constant dense<0.000000e+00> : vector<1xf32>
      %34 = vector.multi_reduction <add>, %33, %cst_25 [1, 2] : vector<1x8x128xf32> to vector<1xf32>
      %35 = vector.shape_cast %34 : vector<1xf32> to vector<1x1x1xf32>
      %36 = vector.extract %35[0, 0, 0] : f32 from vector<1x1x1xf32>
      %c0_26 = arith.constant 0 : index
      %c0_27 = arith.constant 0 : index
      %37 = vector.load %arg9[%c0_26, %c0_27] : memref<8x128xf32, #tpu.memory_space<vmem>>, vector<8x128xf32>
      %38 = vector.shape_cast %37 : vector<8x128xf32> to vector<1x8x128xf32>
      %cst_28 = arith.constant dense<0.000000e+00> : vector<1xf32>
      %39 = vector.multi_reduction <add>, %38, %cst_28 [1, 2] : vector<1x8x128xf32> to vector<1xf32>
      %40 = vector.shape_cast %39 : vector<1xf32> to vector<1x1x1xf32>
      %41 = vector.extract %40[0, 0, 0] : f32 from vector<1x1x1xf32>
      %42 = vector.broadcast %36 : f32 to vector<1x1x1x128xf32>
      %c0_29 = arith.constant 0 : index
      %c0_30 = arith.constant 0 : index
      %c0_31 = arith.constant 0 : index
      %c0_32 = arith.constant 0 : index
      %43 = vector.load %arg6[%c0_29, %c0_30, %c0_31, %c0_32] : memref<1x1x1x128xf32, #tpu.memory_space<vmem>>, vector<1x1x1x128xf32>
      tpu.vector_store %arg6[%c0_29, %c0_30, %c0_31, %c0_32], %42 {strides = array<i32>} : memref<1x1x1x128xf32, #tpu.memory_space<vmem>>, vector<1x1x1x128xf32>,
      %44 = vector.broadcast %41 : f32 to vector<1x1x1x128xf32>
      %c0_33 = arith.constant 0 : index
      %c0_34 = arith.constant 0 : index
      %c0_35 = arith.constant 0 : index
      %c0_36 = arith.constant 0 : index
      %45 = vector.load %arg7[%c0_33, %c0_34, %c0_35, %c0_36] : memref<1x1x1x128xf32, #tpu.memory_space<vmem>>, vector<1x1x1x128xf32>
      tpu.vector_store %arg7[%c0_33, %c0_34, %c0_35, %c0_36], %44 {strides = array<i32>} : memref<1x1x1x128xf32, #tpu.memory_space<vmem>>, vector<1x1x1x128xf32>,
    } else {
    }
    return
  }
  func.func @transform_0(%arg0: i32, %arg1: i32, %arg2: i32) -> (i32, i32, i32) {
    %c1_i32 = arith.constant 1 : i32
    %0 = arith.muli %arg0, %c1_i32 : i32
    %1 = arith.addi %0, %arg2 : i32
    %c0_i32 = arith.constant 0 : i32
    %c0_i32_0 = arith.constant 0 : i32
    return %arg1, %1, %c0_i32 : i32, i32, i32
  }
  func.func @transform_1(%arg0: i32, %arg1: i32, %arg2: i32) -> (i32, i32, i32) {
    %c1_i32 = arith.constant 1 : i32
    %0 = arith.muli %arg0, %c1_i32 : i32
    %1 = arith.addi %0, %arg2 : i32
    %c0_i32 = arith.constant 0 : i32
    %c0_i32_0 = arith.constant 0 : i32
    return %arg1, %1, %c0_i32 : i32, i32, i32
  }
  func.func @transform_2(%arg0: i32, %arg1: i32, %arg2: i32) -> (i32, i32, i32) {
    %c1_i32 = arith.constant 1 : i32
    %0 = arith.muli %arg0, %c1_i32 : i32
    %1 = arith.addi %0, %arg2 : i32
    %c0_i32 = arith.constant 0 : i32
    %c0_i32_0 = arith.constant 0 : i32
    return %arg1, %1, %c0_i32 : i32, i32, i32
  }
  func.func @transform_3(%arg0: i32, %arg1: i32, %arg2: i32) -> (i32, i32, i32, i32) {
    %c0_i32 = arith.constant 0 : i32
    %c0_i32_0 = arith.constant 0 : i32
    %c0_i32_1 = arith.constant 0 : i32
    return %arg0, %arg1, %c0_i32, %c0_i32_0 : i32, i32, i32, i32
  }
  func.func @transform_4(%arg0: i32, %arg1: i32, %arg2: i32) -> (i32, i32, i32, i32) {
    %c0_i32 = arith.constant 0 : i32
    %c0_i32_0 = arith.constant 0 : i32
    %c0_i32_1 = arith.constant 0 : i32
    return %arg0, %arg1, %c0_i32, %c0_i32_0 : i32, i32, i32, i32
  }
}

</mosaic_0001>

<bundles_post_ra>
// kernel: miou_loss_new.1
= control target key start
LH: loop header
LB: loop body
LE: loop exit
PB: predicated region body
PF: predicated region fallthrough
CT: control target
= control target key end

     0   :  { %s715_s15 = smov 0   ;;  %s717_s16 = smov 0   ;;  %s763_s0 = inlined_call_operand.vmem [shape: bf16[2,32,128], index: 0, kind: input, shape index: {}]   ;;  %s764_s1 = inlined_call_operand.vmem [shape: f32[2,32,128], index: 1, kind: input, shape index: {}]   ;;  %s765_s2 = inlined_call_operand.vmem [shape: f32[2,32,128], index: 2, kind: input, shape index: {}]   ;;  %s766_s3 = inlined_call_operand.vmem [shape: f32[1,2,1,128], index: 3, kind: output, shape index: {0}]   ;;  %s767_s4 = inlined_call_operand.vmem [shape: f32[1,2,1,128], index: 4, kind: output, shape index: {1}]  }
   0x1   :  { %s719_s17 = smov 0  }
   0x2 LB: > { %s30_s18 = sadd.s32 1, %s684_s16  ;;  %p609_p0 = scmp.ge.s32.totalorder %s688_s17, 1  ;;  %s688_s17 = sphi %s719_s17, %s15_s17   ;;  %s684_s16 = sphi %s717_s16, %s769_s16   ;;  %s680_s15 = sphi %s715_s15, %s768_s15  }
   0x3   : > { %p32_p1 = scmp.ge.s32.totalorder %s30_s18, 2  ;;  %p241_p2 = scmp.lt.s32.totalorder %s688_s17, 3 }
   0x5   : > { %s771_s18 = smov (%p32_p1, %s30_s18), 0  ;;  %p242_p3 = pnand %p609_p0, %p241_p2 }
   0x6   : > { %p303_p4 = scmp.lt.s32.totalorder (!%p242_p3), %s680_s15, 1 }
   0x7   : > { %245 = sbr.rel (%p242_p3) target bundleno = 258 (0x102), region = 32 }
   0xe   : > { %s773_s15 = smov (!%p303_p4, %s680_s15), 1 }
   0xf   : > { %s618_s19 = sshll.u32 %s773_s15, 4  ;;  %s619_s23 = sshll.u32 %s773_s15, 5 }
  0x10   : > { %s310_s22 = scalar_lea.vmem %s763_s0, %s618_s19  ;;  %s322_s26 = scalar_lea.vmem %s764_s1, %s619_s23 }
  0x11   : > { %v622_v0 = vld [vmem:[%s310_s22] sm:$0xff]   ;;  %v629_v1 = vld [vmem:[%s310_s22 + $0x8] sm:$0xff]   ;;  %s334_s29 = scalar_lea.vmem %s765_s2, %s619_s23  ;;  %v367_v18 = vld [vmem:[%s322_s26 + $0x10] sm:$0xff]  ;;  %s343_s6 = scalar_lea.vmem %s766_s3, %s773_s15 }
  0x12   : > { %v623_v2 = vunpack.c.l.bf16 %v622_v0  ;;  %v624_v3 = vunpack.c.h.bf16 %v622_v0  ;;  %v627_v4 = vunpack.c.l.bf16 %v629_v1  ;;  %v628_v5 = vunpack.c.h.bf16 %v629_v1  ;;  %v365_v11 = vld [vmem:[%s322_s26] sm:$0xff]  ;;  %v366_v14 = vld [vmem:[%s322_s26 + $0x8] sm:$0xff]  ;;  %v371_v19 = vld [vmem:[%s334_s29 + $0x10] sm:$0xff]  ;;  %s350_s10 = scalar_lea.vmem %s767_s4, %s773_s15 }
  0x13   : > { %v369_v12 = vld [vmem:[%s334_s29] sm:$0xff]  ;;  %v370_v15 = vld [vmem:[%s334_s29 + $0x8] sm:$0xff]  ;;  %v368_v22 = vld [vmem:[%s322_s26 + $0x18] sm:$0xff]  ;;  %v395_v32 = vmul.f32 %v371_v19, %v367_v18 }
  0x14   : > { %v373_v6 = vmul.f32 0.5, %v623_v2  ;;  %v374_v7 = vmul.f32 0.5, %v624_v3  ;;  %v375_v8 = vmul.f32 0.5, %v627_v4  ;;  %v376_v9 = vmul.f32 0.5, %v628_v5  ;;  %v372_v23 = vld [vmem:[%s334_s29 + $0x18] sm:$0xff] }
  0x15   : > { %v393_v26 = vmul.f32 %v369_v12, %v365_v11  ;;  %v394_v29 = vmul.f32 %v370_v15, %v366_v14  ;;  %v396_v35 = vmul.f32 %v372_v23, %v368_v22 }
  0x16   : > { %658 = vtanh.f32 %v373_v6 }
  0x17   : > { %660 = vtanh.f32 %v374_v7 }
  0x18   : > { %662 = vtanh.f32 %v375_v8 }
  0x19   : > { %664 = vtanh.f32 %v376_v9 }
  0x20   : > { %v659_v10 = vpop.eup %658 }
  0x21   : > { %v661_v13 = vpop.eup %660  ;;  %v381_v16 = vadd.f32 1.0, %v659_v10 }
  0x22   : > { %v663_v17 = vpop.eup %662  ;;  %v382_v20 = vadd.f32 1.0, %v661_v13 }
  0x23   : > { %v665_v21 = vpop.eup %664  ;;  %v383_v24 = vadd.f32 1.0, %v663_v17  ;;  %v385_v25 = vmul.f32 0.5, %v381_v16 }
  0x24   : > { %v384_v27 = vadd.f32 1.0, %v665_v21  ;;  %v386_v28 = vmul.f32 0.5, %v382_v20 }
  0x25   : > { %v387_v30 = vmul.f32 0.5, %v383_v24  ;;  %v389_v31 = vmul.f32 %v385_v25, %v369_v12 }
  0x26   : > { %v388_v33 = vmul.f32 0.5, %v384_v27  ;;  %v390_v34 = vmul.f32 %v386_v28, %v370_v15 }
  0x27   : > { %v391_v36 = vmul.f32 %v387_v30, %v371_v19  ;;  %v397_v37 = vmul.f32 %v393_v26, %v389_v31  ;;  %v408_v38 = vadd.f32 %v393_v26, %v389_v31 }
  0x28   : > { %v392_v39 = vmul.f32 %v388_v33, %v372_v23  ;;  %v398_v40 = vmul.f32 %v394_v29, %v390_v34  ;;  %v409_v41 = vadd.f32 %v394_v29, %v390_v34 }
  0x29   : > { %v399_v42 = vmul.f32 %v395_v32, %v391_v36  ;;  %v410_v43 = vadd.f32 %v395_v32, %v391_v36  ;;  %v412_v44 = vsub.f32 %v408_v38, %v397_v37 }
  0x2a   : > { %v400_v45 = vmul.f32 %v396_v35, %v392_v39  ;;  %v402_v46 = vadd.f32 %v398_v40, %v397_v37  ;;  %v411_v47 = vadd.f32 %v396_v35, %v392_v39  ;;  %v413_v48 = vsub.f32 %v409_v41, %v398_v40 }
  0x2b   : > { %v414_v49 = vsub.f32 %v410_v43, %v399_v42 }
  0x2c   : > { %v403_v50 = vadd.f32 %v402_v46, %v399_v42  ;;  %v415_v51 = vsub.f32 %v411_v47, %v400_v45  ;;  %v416_v52 = vadd.f32 %v413_v48, %v412_v44 }
  0x2e   : > { %v404_v53 = vadd.f32 %v403_v50, %v400_v45  ;;  %v417_v54 = vadd.f32 %v416_v52, %v414_v49 }
  0x30   : > { %425 = vadd.xlane.f32.xlu0 %v404_v53  ;;  %v418_v55 = vadd.f32 %v417_v54, %v415_v51 }
  0x34   : > { %435 = vadd.xlane.f32.xlu0 %v418_v55 }
  0xbd   : > { %v426_v56 = vpop.xlane.xlu0 %425 }
  0xbe   : > { %v427_v57 = vrot.slane %v426_v56, 4 }
  0xc0   : > { %v428_v58 = vadd.f32 %v427_v57, %v426_v56 }
  0xc1   : > { %v436_v59 = vpop.xlane.xlu0 %435 }
  0xc2   : > { %v429_v60 = vrot.slane %v428_v58, 2  ;;  %v437_v61 = vrot.slane %v436_v59, 4 }
  0xc4   : > { %v438_v62 = vadd.f32 %v437_v61, %v436_v59  ;;  %v430_v63 = vadd.f32 %v429_v60, %v428_v58 }
  0xc6   : > { %v439_v0 = vrot.slane %v438_v62, 2  ;;  %v431_v1 = vrot.slane %v430_v63, 1 }
  0xc8   : > { %v440_v2 = vadd.f32 %v439_v0, %v438_v62  ;;  %v432_v3 = vadd.f32 %v431_v1, %v430_v63 }
  0xca   : > { %630 = vpush %v432_v3  ;;  %v441_v4 = vrot.slane %v440_v2, 1 }
  0xcc   : > { %v442_v5 = vadd.f32 %v441_v4, %v440_v2 }
  0xce   : > { %632 = vpush %v442_v5 }
  0xfb   : > { %s631_s7 = spop %630 }
  0xfc   : > { %v444_v6 = vstv %s631_s7 }
  0xfd   : > { %445 = vst [vmem:[%s343_s6] sm:$0x1] %v444_v6 }
  0xff   : > { %s633_s11 = spop %632 }
 0x100   : > { %v446_v7 = vstv %s633_s11 }
 0x101   : > { %447 = vst [vmem:[%s350_s10] sm:$0x1] %v446_v7 }
 0x102 PF: > { %s15_s17 = sadd.s32 1, %s688_s17   ;;  %s768_s15 = smov %s684_s16 }
 0x103   : > { %p12_p5 = scmp.ge.s32.totalorder %s15_s17, 4   ;;  %s769_s16 = smov %s771_s18 }
 0x105   :  { %14 = sbr.rel (!%p12_p5) target bundleno = 2 (0x2), region = 88 }

</bundles_post_ra>
